<compile_context>
chip_gen: v5e
topology: v5e:2x2
jax: 0.10.0
libtpu: 0.0.40
codegen_flags: <defaults>
</compile_context>

<pallas_src>
import functools

import jax
import jax.numpy as jnp
from jax.experimental import pallas as pl
from jax.experimental.pallas import tpu as pltpu


_FUSE_TRANSPOSE_MIN_NO = 64      # fuse channel-last transpose only when lane fill >= 50%


# ----------------------------------------------------------------------------- kernel
def _yolo_kernel(anchors_ref, x_ref, o_ref, *scratch, stride, new_coords,
                 nx, na_blk, tile_s, fused):
    """One grid step: `na_blk` anchors x one S tile of one batch element.

    anchors_ref: (2*na,) f32 SMEM              flattened (w0, h0, w1, h1, ...)
    x_ref:       (1, na_blk, no, tile_s) VMEM  raw predictions, channel-major
    o_ref:       fused:  (1, na_blk, tile_s, no) VMEM  channel-last (in-kernel transpose)
                 !fused: (1, na_blk, no, tile_s) VMEM  channel-major (lane-dense stores)
    scratch:     (tmp_ref,) f32 (no, tile_s) staging tile when fused, else ()
    """
    no = x_ref.shape[2]
    a0 = pl.program_id(1) * na_blk
    stride_f = jnp.float32(stride)
    nx_f = jnp.float32(nx)

    # Spatial grid offsets for this S tile, rebuilt in-kernel (no HBM input).
    # flat index s = gy*nx + gx (row-major, x fastest). Float div/floor is exact
    # for the integer magnitudes involved (S < 2^24).
    s_f = (jax.lax.broadcasted_iota(jnp.int32, (1, tile_s), 1)
           + pl.program_id(2) * tile_s).astype(jnp.float32)
    gy = jnp.floor(s_f / nx_f)
    gx = s_f - gy * nx_f
    g = jnp.concatenate([gx, gy], axis=0)                        # (2, tile_s)

    for j in range(na_blk):                                      # static unroll (na_blk <= 3)
        aw = anchors_ref[2 * (a0 + j)]                           # scalar SMEM reads
        ah = anchors_ref[2 * (a0 + j) + 1]

        x = x_ref[0, j].astype(jnp.float32)                      # (no, tile_s)

        if new_coords:
            # rows 0:2 -> (x + grid) * stride ; rows 2:4 -> x^2 * 4*anchor ; rest unchanged
            base = x
            head = jnp.concatenate(
                [(x[0:2] + g) * stride_f,
                 (x[2:3] * x[2:3]) * (4.0 * aw),
                 (x[3:4] * x[3:4]) * (4.0 * ah)], axis=0)        # (4, tile_s)
        else:
            # rows 0:2 -> (sigmoid + grid) * stride ; rows 2:4 -> exp * anchor ; rest sigmoid
            sig = jax.nn.sigmoid(x)                              # whole tile: EUP has slack
            base = sig
            head = jnp.concatenate(
                [(sig[0:2] + g) * stride_f,
                 jnp.exp(x[2:3]) * aw,
                 jnp.exp(x[3:4]) * ah], axis=0)                  # (4, tile_s)

        if fused:
            # TODO(synk): bf16 staging on v6e/v7x would halve this scratch; kept f32 for v5e.
            tmp_ref, = scratch
            tmp_ref[...] = base
            tmp_ref[0:4, :] = head
            o_ref[0, j] = tmp_ref[...].T.astype(o_ref.dtype)     # single XLU transpose
        else:
            o_ref[0, j] = base.astype(o_ref.dtype)               # lane-dense full-tile store
            o_ref[0, j, 0:4, :] = head.astype(o_ref.dtype)       # aligned 4-row overwrite


# ------------------------------------------------------------------- tiling / VMEM math
def _sublane_pack(dtype):
    return {1: 32, 2: 16, 4: 8}.get(jnp.dtype(dtype).itemsize, 8)


def _rpad(n, m):
    return -(-n // m) * m


def _padded_block_bytes(no, tile_s, na_blk, in_dtype, out_dtype, fused):
    """Real (padded) VMEM bytes of one grid step: double-buffered in+out blocks + scratch."""
    in_b = jnp.dtype(in_dtype).itemsize
    out_b = jnp.dtype(out_dtype).itemsize
    # input block (1, na_blk, no, tile_s): sublane = no, lane = tile_s
    in_blk = na_blk * _rpad(no, _sublane_pack(in_dtype)) * _rpad(tile_s, 128) * in_b
    if fused:
        # output block (1, na_blk, tile_s, no): lane dim `no` pads to 128
        out_blk = na_blk * _rpad(tile_s, _sublane_pack(out_dtype)) * _rpad(no, 128) * out_b
        scratch = _rpad(no, 8) * _rpad(tile_s, 128) * 4
    else:
        out_blk = na_blk * _rpad(no, _sublane_pack(out_dtype)) * _rpad(tile_s, 128) * out_b
        scratch = 0
    return 2 * (in_blk + out_blk) + scratch


def _vmem_capacity_bytes():
    try:
        cap = getattr(pltpu.get_tpu_info(), "vmem_capacity_bytes", None)
        if cap:
            return int(cap)
    except Exception:
        pass
    return 64 << 20                      # conservative: v7x per-TensorCore VMEM


def _choose_tiling(S, no, bs, na, in_dtype, out_dtype, fused, budget):
    def ws(nab, t):
        return _padded_block_bytes(no, t, nab, in_dtype, out_dtype, fused)

    # Fold all anchors into one block only when per-anchor blocks are tiny and the
    # batch axis alone still provides >= 4 grid steps (keeps pipelining / both cores busy).
    na_blk = na if (bs >= 4 and ws(1, S) < (256 << 10) and ws(na, S) <= budget) else 1
    n_outer = bs * (na // na_blk)

    tile_s = S
    if S % 128 == 0 and S > 128:
        target = min(budget, 4 << 20)
        if n_outer < 4 or ws(na_blk, S) > target:
            cands = [t for t in range(128, S, 128) if S % t == 0]   # proper divisors of S
            if cands:
                tile_s = cands[0]
                for t in reversed(cands):                            # largest feasible first
                    if ws(na_blk, t) <= target and n_outer * (S // t) >= 4:
                        tile_s = t
                        break
    # TODO(synk): S not divisible by 128 (13x13 / 26x26 YOLO heads) stays one full-S block
    # per (batch, anchor); splitting it would need edge-masked stores.
    return na_blk, tile_s


# ----------------------------------------------------------------------------- wrapper
def yolo_layer_forward(x, anchors, img_size, num_classes, new_coords=False):
    """Inference-mode forward of YOLOLayer.

    x:       (bs, num_anchors*(num_classes+5), ny, nx)  NCHW
    anchors: (num_anchors, 2)
    returns: (bs, num_anchors*ny*nx, num_classes+5), same dtype as x
    """
    bs, c, ny, nx = x.shape
    na = int(anchors.shape[0])
    no = num_classes + 5
    assert c == na * no, f"channels {c} != num_anchors*no {na * no}"
    stride = img_size // ny
    S = ny * nx
    out_dtype = x.dtype

    # Free (contiguous) reshape: (bs, na*no, ny, nx) -> (bs, na, no, S), channel-major.
    x_r = x.reshape(bs, na, no, S)

    fused = no >= _FUSE_TRANSPOSE_MIN_NO

    cap = _vmem_capacity_bytes()
    budget = min(cap // 2, 32 << 20) // 2        # per-step blocks+scratch, >=2x headroom
    na_blk, tile_s = _choose_tiling(S, no, bs, na, x.dtype, out_dtype, fused, budget)
    ws = _padded_block_bytes(no, tile_s, na_blk, x.dtype, out_dtype, fused)
    vmem_limit = int(min(cap, max(32 << 20, 2 * ws)))

    kernel = functools.partial(_yolo_kernel, stride=stride, new_coords=new_coords,
                               nx=nx, na_blk=na_blk, tile_s=tile_s, fused=fused)

    x_spec = pl.BlockSpec((1, na_blk, no, tile_s), lambda b, a, s: (b, a, 0, s))
    if fused:
        out_shape = jax.ShapeDtypeStruct((bs, na, S, no), out_dtype)
        out_spec = pl.BlockSpec((1, na_blk, tile_s, no), lambda b, a, s: (b, a, s, 0))
        scratch_shapes = [pltpu.VMEM((no, tile_s), jnp.float32)]
    else:
        out_shape = jax.ShapeDtypeStruct((bs, na, no, S), out_dtype)
        out_spec = pl.BlockSpec((1, na_blk, no, tile_s), lambda b, a, s: (b, a, 0, s))
        scratch_shapes = []

    out = pl.pallas_call(
        kernel,
        out_shape=out_shape,
        grid=(bs, na // na_blk, S // tile_s),
        in_specs=[
            pl.BlockSpec(memory_space=pltpu.MemorySpace.SMEM),   # anchors (w,h) pairs
            x_spec,
        ],
        out_specs=out_spec,
        scratch_shapes=scratch_shapes,
        compiler_params=pltpu.CompilerParams(
            dimension_semantics=("parallel", "parallel", "parallel"),
            vmem_limit_bytes=vmem_limit),
    )(anchors.astype(jnp.float32).reshape(-1), x_r)

    if fused:
        return out.reshape(bs, na * S, no)                       # free reshape
    # Channel-major kernel output: one cheap XLA permute pass outside the kernel
    # (cheaper than 128/no-inflated masked vst inside the kernel for small no).
    return jnp.swapaxes(out, 2, 3).reshape(bs, na * S, no)


# --------------------------------------------------------------------------- reference
def yolo_layer_ref(x, anchors, img_size, num_classes, new_coords=False):
    """Pure-JAX reference mirroring the PyTorch forward (eval mode)."""
    bs, c, ny, nx = x.shape
    na = anchors.shape[0]
    no = num_classes + 5
    stride = img_size // ny
    xr = x.reshape(bs, na, no, ny, nx).transpose(0, 1, 3, 4, 2)  # (bs,na,ny,nx,no)
    yv, xv = jnp.meshgrid(jnp.arange(ny), jnp.arange(nx), indexing="ij")
    grid = jnp.stack((xv, yv), 2).reshape(1, 1, ny, nx, 2).astype(jnp.float32)
    anchor_grid = anchors.reshape(1, na, 1, 1, 2).astype(jnp.float32)
    if new_coords:
        xy = (xr[..., 0:2] + grid) * stride
        wh = xr[..., 2:4] ** 2 * (4.0 * anchor_grid)
        rest = xr[..., 4:]
    else:
        xy = (jax.nn.sigmoid(xr[..., 0:2]) + grid) * stride
        wh = jnp.exp(xr[..., 2:4]) * anchor_grid
        rest = jax.nn.sigmoid(xr[..., 4:])
    out = jnp.concatenate([xy, wh, rest], axis=-1)
    return out.reshape(bs, -1, no)


# TODO(synk): the training-mode branch of forward() is a pure view/permute with no
# arithmetic, and the MSE/BCE loss modules are never used in forward; they are
# intentionally not implemented as kernels.

if __name__ == "__main__":
    # Small, deterministic configuration consistent with the module:
    #   num_anchors = 3, num_classes = 3  ->  no = 8, channels = 24
    anchors_list = [(10.0, 13.0), (16.0, 30.0), (33.0, 23.0)]
    num_classes = 3
    na = len(anchors_list)
    no = num_classes + 5
    anchors = jnp.asarray(anchors_list, dtype=jnp.float32)       # (3, 2)

    key = jax.random.PRNGKey(0)
    k1, k2 = jax.random.split(key)
    ok = True

    # Config 1: 16x16 head (S=256, lane-aligned), bs=2, both new_coords branches.
    bs, ny, nx, img_size = 2, 16, 16, 64                          # stride = 4
    x = jax.random.normal(k1, (bs, na * no, ny, nx), dtype=jnp.float32)
    for new_coords in (False, True):
        out = jax.block_until_ready(
            yolo_layer_forward(x, anchors, img_size, num_classes, new_coords))
        ref = yolo_layer_ref(x, anchors, img_size, num_classes, new_coords)
        assert out.shape == (bs, na * ny * nx, no), out.shape
        if not jnp.allclose(out, ref, rtol=1e-5, atol=1e-5):
            ok = False
            print(f"MISMATCH cfg1 new_coords={new_coords}: "
                  f"max abs err {float(jnp.max(jnp.abs(out - ref)))}")

    # Config 2: 13x13 head (S=169, not a multiple of 128), bs=1.
    bs2, ny2, nx2, img_size2 = 1, 13, 13, 416                     # stride = 32
    x2 = jax.random.normal(k2, (bs2, na * no, ny2, nx2), dtype=jnp.float32)
    out2 = jax.block_until_ready(
        yolo_layer_forward(x2, anchors, img_size2, num_classes, False))
    ref2 = yolo_layer_ref(x2, anchors, img_size2, num_classes, False)
    assert out2.shape == (bs2, na * ny2 * nx2, no), out2.shape
    if not jnp.allclose(out2, ref2, rtol=1e-5, atol=1e-5):
        ok = False
        print(f"MISMATCH cfg2: max abs err {float(jnp.max(jnp.abs(out2 - ref2)))}")

    if ok:
        print("KERNEL_OK")
</pallas_src>

<mosaic_0001>
module attributes {stable_mosaic.version = 11 : i64} {
  func.func @_yolo_kernel(%arg0: i32, %arg1: i32, %arg2: i32, %arg3: memref<6xf32, #tpu.memory_space<smem>>, %arg4: memref<1x1x8x256xf32, #tpu.memory_space<vmem>>, %arg5: memref<1x1x8x256xf32, #tpu.memory_space<vmem>>) attributes {dimension_semantics = [#tpu.dimension_semantics<parallel>, #tpu.dimension_semantics<parallel>, #tpu.dimension_semantics<parallel>], iteration_bounds = array<i64: 2, 3, 1>, scalar_prefetch = 0 : i64, scratch_operands = 0 : i64, tpu.core_type = #tpu.core_type<tc>, window_params = [{transform_indices = @transform_0, window_bounds = array<i64: 6>}, {transform_indices = @transform_1, window_bounds = array<i64: 1, 1, 8, 256>}, {transform_indices = @transform_2, window_bounds = array<i64: 1, 1, 8, 256>}]} {
    %c1_i32 = arith.constant 1 : i32
    %0 = arith.muli %arg1, %c1_i32 : i32
    %1 = tpu.iota {dimensions = array<i32: 1>} : vector<1x256xi32>
    %c256_i32 = arith.constant 256 : i32
    %2 = arith.muli %arg2, %c256_i32 : i32
    %3 = vector.broadcast %2 : i32 to vector<1x256xi32>
    %4 = arith.addi %1, %3 : vector<1x256xi32>
    %5 = arith.sitofp %4 : vector<1x256xi32> to vector<1x256xf32>
    %cst = arith.constant 1.600000e+01 : f32
    %6 = vector.broadcast %cst : f32 to vector<1x256xf32>
    %7 = arith.divf %5, %6 : vector<1x256xf32>
    %8 = math.floor %7 : vector<1x256xf32>
    %cst_0 = arith.constant 1.600000e+01 : f32
    %9 = vector.broadcast %cst_0 : f32 to vector<1x256xf32>
    %10 = arith.mulf %8, %9 : vector<1x256xf32>
    %11 = arith.subf %5, %10 : vector<1x256xf32>
    %12 = tpu.concatenate %11, %8 in 0 : vector<1x256xf32>, vector<1x256xf32> -> vector<2x256xf32>
    %c0_i32 = arith.constant 0 : i32
    %13 = arith.addi %0, %c0_i32 : i32
    %c2_i32 = arith.constant 2 : i32
    %14 = arith.muli %c2_i32, %13 : i32
    %15 = arith.index_cast %14 : i32 to index
    %16 = memref.load %arg3[%15] : memref<6xf32, #tpu.memory_space<smem>>
    %c0_i32_1 = arith.constant 0 : i32
    %17 = arith.addi %0, %c0_i32_1 : i32
    %c2_i32_2 = arith.constant 2 : i32
    %18 = arith.muli %c2_i32_2, %17 : i32
    %c1_i32_3 = arith.constant 1 : i32
    %19 = arith.addi %18, %c1_i32_3 : i32
    %20 = arith.index_cast %19 : i32 to index
    %21 = memref.load %arg3[%20] : memref<6xf32, #tpu.memory_space<smem>>
    %c0 = arith.constant 0 : index
    %c0_4 = arith.constant 0 : index
    %c0_5 = arith.constant 0 : index
    %c0_6 = arith.constant 0 : index
    %22 = vector.load %arg4[%c0, %c0_4, %c0_5, %c0_6] : memref<1x1x8x256xf32, #tpu.memory_space<vmem>>, vector<1x1x8x256xf32>
    %23 = vector.shape_cast %22 : vector<1x1x8x256xf32> to vector<8x256xf32>
    %24 = arith.negf %23 : vector<8x256xf32>
    %25 = math.exp %24 : vector<8x256xf32>
    %cst_7 = arith.constant 1.000000e+00 : f32
    %26 = vector.broadcast %cst_7 : f32 to vector<8x256xf32>
    %27 = arith.addf %26, %25 : vector<8x256xf32>
    %28 = arith.divf %26, %27 : vector<8x256xf32>
    %29 = vector.extract_strided_slice %28 {offsets = [0, 0], sizes = [2, 256], strides = [1, 1]} : vector<8x256xf32> to vector<2x256xf32>
    %30 = arith.addf %29, %12 : vector<2x256xf32>
    %cst_8 = arith.constant 4.000000e+00 : f32
    %31 = vector.broadcast %cst_8 : f32 to vector<2x256xf32>
    %32 = arith.mulf %30, %31 : vector<2x256xf32>
    %33 = vector.extract_strided_slice %23 {offsets = [2, 0], sizes = [1, 256], strides = [1, 1]} : vector<8x256xf32> to vector<1x256xf32>
    %34 = math.exp %33 : vector<1x256xf32>
    %35 = vector.broadcast %16 : f32 to vector<1x256xf32>
    %36 = arith.mulf %34, %35 : vector<1x256xf32>
    %37 = vector.extract_strided_slice %23 {offsets = [3, 0], sizes = [1, 256], strides = [1, 1]} : vector<8x256xf32> to vector<1x256xf32>
    %38 = math.exp %37 : vector<1x256xf32>
    %39 = vector.broadcast %21 : f32 to vector<1x256xf32>
    %40 = arith.mulf %38, %39 : vector<1x256xf32>
    %41 = tpu.concatenate %32, %36, %40 in 0 : vector<2x256xf32>, vector<1x256xf32>, vector<1x256xf32> -> vector<4x256xf32>
    %c0_9 = arith.constant 0 : index
    %c0_10 = arith.constant 0 : index
    %c0_11 = arith.constant 0 : index
    %c0_12 = arith.constant 0 : index
    %42 = vector.load %arg5[%c0_9, %c0_10, %c0_11, %c0_12] : memref<1x1x8x256xf32, #tpu.memory_space<vmem>>, vector<1x1x8x256xf32>
    %43 = vector.shape_cast %42 : vector<1x1x8x256xf32> to vector<8x256xf32>
    %44 = vector.shape_cast %28 : vector<8x256xf32> to vector<1x1x8x256xf32>
    tpu.vector_store %arg5[%c0_9, %c0_10, %c0_11, %c0_12], %44 {strides = array<i32>} : memref<1x1x8x256xf32, #tpu.memory_space<vmem>>, vector<1x1x8x256xf32>,
    %c0_13 = arith.constant 0 : index
    %c0_14 = arith.constant 0 : index
    %c0_15 = arith.constant 0 : index
    %c0_16 = arith.constant 0 : index
    %45 = vector.load %arg5[%c0_13, %c0_14, %c0_15, %c0_16] : memref<1x1x8x256xf32, #tpu.memory_space<vmem>>, vector<1x1x4x256xf32>
    %46 = vector.shape_cast %45 : vector<1x1x4x256xf32> to vector<4x256xf32>
    %47 = vector.shape_cast %41 : vector<4x256xf32> to vector<1x1x4x256xf32>
    tpu.vector_store %arg5[%c0_13, %c0_14, %c0_15, %c0_16], %47 {strides = array<i32>} : memref<1x1x8x256xf32, #tpu.memory_space<vmem>>, vector<1x1x4x256xf32>,
    return
  }
  func.func @transform_0(%arg0: i32, %arg1: i32, %arg2: i32) -> i32 {
    %c0_i32 = arith.constant 0 : i32
    %c0_i32_0 = arith.constant 0 : i32
    return %c0_i32 : i32
  }
  func.func @transform_1(%arg0: i32, %arg1: i32, %arg2: i32) -> (i32, i32, i32, i32) {
    %c0_i32 = arith.constant 0 : i32
    %c0_i32_0 = arith.constant 0 : i32
    return %arg0, %arg1, %c0_i32, %arg2 : i32, i32, i32, i32
  }
  func.func @transform_2(%arg0: i32, %arg1: i32, %arg2: i32) -> (i32, i32, i32, i32) {
    %c0_i32 = arith.constant 0 : i32
    %c0_i32_0 = arith.constant 0 : i32
    return %arg0, %arg1, %c0_i32, %arg2 : i32, i32, i32, i32
  }
}

</mosaic_0001>

<bundles_post_ra>
// kernel: tpu_custom_call.1
= control target key start
LH: loop header
LB: loop body
LE: loop exit
PB: predicated region body
PF: predicated region fallthrough
CT: control target
= control target key end

     0   :  { %s921_s0 = inlined_call_operand.hbm [shape: f32[6], index: 0, kind: input, shape index: {}]   ;;  %s922_s1 = inlined_call_operand.hbm [shape: f32[2,3,8,256], index: 1, kind: input, shape index: {}]   ;;  %s923_s2 = inlined_call_operand.hbm [shape: f32[2,3,8,256], index: 2, kind: output, shape index: {}]  }
   0x1   :  { %928 = sst [smem:[#allocation15_spill]] %s921_s0 }
   0x2   :  { %7 = vsyncpa [#allocation5], 0 }
   0x3   :  { %8 = vsyncpa [#allocation3], 0 }
   0x4   :  { %10 = vsyncpa [#allocation3 + $0x1], 0 }
   0x5   :  { %11 = vsyncpa [#allocation4], 0 }
   0x6   :  { %13 = vsyncpa [#allocation4 + $0x1], 0  ;;  %s723_s9 = smov 0   ;;  %s725_s10 = smov 0  }
   0x7   :  { %s727_s11 = smov 0   ;;  %s729_s12 = smov 0  }
   0x8   :  { %s731_s13 = smov 0   ;;  %s733_s14 = smov 0  }
   0x9   :  { %s735_s15 = smov 0   ;;  %s737_s16 = smov 0  }
   0xa LB: > { %929 = sst [smem:[#allocation11_spill]] %s676_s9  ;;  %s431_s17 = sadd.s32 4294967295, %s704_s16   ;;  %s704_s16 = sphi %s737_s16, %s19_s16   ;;  %s700_s15 = sphi %s735_s15, %s954_s15   ;;  %s696_s14 = sphi %s733_s14, %s953_s14   ;;  %s692_s13 = sphi %s731_s13, %s952_s13   ;;  %s688_s12 = sphi %s729_s12, %s951_s12   ;;  %s684_s11 = sphi %s727_s11, %s950_s11   ;;  %s680_s10 = sphi %s725_s10, %s949_s10   ;;  %s676_s9 = sphi %s723_s9, %s948_s9  }
   0xb   : > { %s432_s18 = sadd.s32 4294967294, %s704_s16   ;;  %p83_p0 = scmp.ne.s32.totalorder %s680_s10, %s676_s9 }
   0xc   : > { %p767_p1 = scmp.eq.s32.totalorder %s431_s17, 0  ;;  %p117_p2 = scmp.eq.s32.totalorder %s432_s18, 5 }
   0xd   : > { %p433_p4 = scmp.ge.s32.totalorder %s704_s16, 1  ;;  %p124_p6 = scmp.lt.s32.totalorder %s704_s16, 7 }
   0xe   : > { %p773_p3 = por %p767_p1, %p83_p0  ;;  %p778_p5 = por %p117_p2, %p83_p0 }
   0xf   : > { %s934_s0 = sld [smem:[#allocation15_spill]]  ;;  %p786_p7 = pnand %p433_p4, %p124_p6 }
  0x10   : > { %s932_s21 = scalar_select %p778_p5, 1, 0 }
  0x11   : > { %p461_p8 = pneg %p786_p7  ;;  %s34_s26 = sadd.s32 1, %s696_s14 }
  0x12   : > { %933 = sst [smem:[#allocation12_spill]] %s932_s21  ;;  %s706_s27 = smov [#allocation2]  }
  0x13   : > { %p462_p9 = pnand %p461_p8, %p767_p1  ;;  %p36_p10 = scmp.ge.s32.totalorder %s34_s26, 3 }
  0x14   : > { %s38_s28 = sadd.s32 1, %s700_s15  ;;  %p111_p11 = scmp.eq.s32.totalorder %s431_s17, 5 }
  0x15   : > { %s136_s24 = sshll.u32 %s934_s0, 4  ;;  %p77_p12 = scmp.ne.s32.totalorder %s684_s11, %s680_s10  ;;  %s137_s24 = int_to_ptr.hbm [resolvable:$true] %s136_s24 }
  0x16   : > { %464 = dma.hbm_to_smem (!%p462_p9), %s137_s24, 16, %s706_s27, [#allocation5]  }
  0x17   : > { %s956_s26 = smov (%p36_p10, %s34_s26), 0  ;;  %s958_s28 = smov (!%p36_p10, %s38_s28), %s700_s15 }
  0x18   : > { %936 = sst [smem:[#allocation13_spill]] %s956_s26  ;;  %s70_s29 = sadd.s32 1, %s684_s11 }
  0x19   : > { %p78_p13 = scmp.eq.s32.totalorder %s704_s16, 0  ;;  %p40_p0 = scmp.ge.s32.totalorder %s958_s28, 2 }
  0x1a   : > { %p803_p2 = por %p111_p11, %p77_p12  ;;  %s64_s3 = ssub.s32 %s696_s14, %s956_s26 }
  0x1b   : > { %p809_p4 = por %p78_p13, %p77_p12  ;;  %s960_s28 = smov (%p40_p0, %s958_s28), 0 }
  0x1c   : > { %939 = sst [smem:[#allocation14_spill]] %s960_s28  ;;  %p474_p6 = scmp.lt.s32.totalorder %s704_s16, 6 }
  0x1d   : > { %s147_s5 = sand.u32 1, %s684_s11   ;;  %s63_s6 = ssub.s32 %s700_s15, %s960_s28 }
  0x1e   : > { %s437_s7 = sshll.u32 %s696_s14, 1  ;;  %s65_s8 = sor.u32 %s64_s3, %s63_s6 }
  0x1f   : > { %s436_s17 = sshll.u32 %s147_s5, 4  ;;  %p68_p8 = scmp.eq.s32.totalorder %s65_s8, 0 }
  0x20   : > { %s451_s18 = smul.u32 6, %s700_s15  ;;  %s151_s22 = scalar_lea.vmem [#allocation6], %s436_s17 }
  0x21   : > { %s164_s23 = sshll.u32 %s151_s22, 4  ;;  %p466_p9 = pnand %p474_p6, %p809_p4  ;;  %s165_s23 = int_to_ptr.vmem [resolvable:$true] %s164_s23 }
  0x22   : > { %s822_s24 = scalar_select %p68_p8, %s684_s11, %s70_s29  }
  0x23   : > { %s158_s27 = sadd.s32 %s451_s18, %s437_s7  ;;  %s148_s3 = scalar_lea.sflag [#allocation3], %s147_s5 }
  0x24   : > { %s438_s0 = sshll.u32 %s158_s27, 3  ;;  %173 = sbr.rel (%p786_p7) target bundleno = 87 (0x57), region = 28 }
  0x25   : > { %s160_s9 = scalar_lea.hbm %s922_s1, %s438_s0 }
  0x26   : > { %s162_s28 = sshll.u32 %s160_s9, 4  ;;  %s163_s28 = int_to_ptr.hbm [resolvable:$true] %s162_s28 }
  0x27   : > { %468 = dma.hbm_to_vmem [thread:$0]  (!%p466_p9), %s163_s28, 256, %s165_s23, %s148_s3  }
  0x29   : > { %663 = dma.done.wait (%p767_p1), [#allocation5], 16  }
  0x2a   : > { %665 = vsyncadd (%p767_p1), [#allocation5], 4294967280  ;;  %s838_s29 = sand.u32 1, %s680_s10  }
  0x2b   : > { %s441_s0 = sshll.u32 %s838_s29, 4  ;;  %s181_s9 = scalar_lea.sflag [#allocation3], %s838_s29 }
  0x2c   : > { %s184_s21 = scalar_lea.vmem [#allocation6], %s441_s0 }
  0x2d   : > { %667 = dma.done.wait (%p773_p3), %s181_s9, 256  }
  0x2e   : > { %669 = vsyncadd (%p773_p3), %s181_s9, 4294967040 }
  0x2f   : > { %190 = sfence }
  0x30   : > { %v240_v0 = vld [vmem:[%s184_s21] sm:$0xff]  ;;  %v241_v1 = vld [vmem:[%s184_s21 + $0x8] sm:$0xff]  ;;  %v209_v2 = vlaneseq  ;;  %v707_v3 = vmov 16.0   ;;  %s849_s19 = sshll.u32 %s688_s12, 1  ;;  %s452_s26 = smul.u32 6, %s692_s13  ;;  %vm233_vm5 = vcmask 1040384  }
  0x31   : > { %543 = vrcp.f32 %v707_v3  ;;  %v444_v4 = vmul.f32 -1.442695, %v240_v0  ;;  %v445_v5 = vmul.f32 -1.442695, %v241_v1  ;;  %v284_v16 = vmul.f32 1.442695, %v240_v0 }
  0x32   : > { %v210_v6 = vand.u32 127, %v209_v2  ;;  %v286_v20 = vmul.f32 1.442695, %v241_v1  ;;  %s238_s20 = sadd.s32 1, %s849_s19  ;;  %s853_s25 = sld [smem:[#allocation2 + %s849_s19]]  ;;  %vm294_vm10 = vcmask 1041408  }
  0x33   : > { %545 = vpow2.f32 %v444_v4  ;;  %s856_s12 = sld [smem:[#allocation2 + %s238_s20]]  ;;  %s318_s13 = sadd.s32 %s452_s26, %s849_s19  ;;  %vm297_vm11 = vcmask 1042432  }
  0x34   : > { %547 = vpow2.f32 %v445_v5  ;;  %v211_v10 = vadd.s32 128, %v210_v6  ;;  %v216_v17 = vcvt.s32.f32 %v210_v6  ;;  %s448_s28 = sshll.u32 %s318_s13, 3  ;;  %s206_s7 = scalar_lea.vmem [#allocation7], %s441_s0 }
  0x35   : > { %s320_s6 = scalar_lea.hbm %s923_s2, %s448_s28  ;;  %s322_s8 = sshll.u32 %s206_s7, 4  ;;  %s323_s8 = int_to_ptr.vmem [resolvable:$true] %s322_s8 }
  0x36   : > { %v217_v18 = vcvt.s32.f32 %v211_v10  ;;  %s324_s17 = sshll.u32 %s320_s6, 4  ;;  %s305_s18 = scalar_lea.sflag [#allocation4], %s838_s29  ;;  %s325_s17 = int_to_ptr.hbm [resolvable:$true] %s324_s17 }
  0x37   : > { %v544_v7 = vpop.eup %543  ;;  %s616_s22 = sshra.s32 %s325_s17, 4  ;;  %s622_s0 = scalar_lea.hbm %s923_s2, 96  ;;  %s617_s22 = int_to_ptr.hbm [resolvable:$true] %s616_s22 }
  0x38   : > { %v219_v8 = vmul.f32 16.0, %v544_v7  ;;  %vm223_vm0 = vweird.f32 %v544_v7  ;;  %v288_v51 = vstv %s853_s25  ;;  %s618_s23 = scalar_lea.hbm %s617_s22, 16  ;;  %p623_p10 = scmp.lt.s32.totalorder %s617_s22, %s923_s2 }
  0x39   : > { %v546_v9 = vpop.eup %545  ;;  %v291_v54 = vstv %s856_s12  ;;  %p619_p1 = scmp.ne.s32.totalorder %s617_s22, %s618_s23  ;;  %p624_p11 = scmp.lt.s32.totalorder %s622_s0, %s618_s23 }
  0x3a   : > { %v548_v11 = vpop.eup %547  ;;  %v220_v12 = vsub.f32 1.0, %v219_v8  ;;  %v248_v13 = vadd.f32 1.0, %v546_v9 }
  0x3b   : > { %v249_v14 = vadd.f32 1.0, %v548_v11  ;;  %p620_p3 = pnand %p619_p1, %p803_p2  ;;  %p625_p12 = por %p624_p11, %p623_p10 }
  0x3c   : > { %v221_v15 = vmul.f32 %v544_v7, %v220_v12  ;;  %549 = vrcp.f32 %v248_v13  ;;  %vm255_vm1 = vweird.f32 %v248_v13  ;;  %v259_v29 = vand.u32 2147483647, %v248_v13 }
  0x3d   : > { %551 = vrcp.f32 %v249_v14  ;;  %v261_v30 = vand.u32 2147483648, %v248_v13  ;;  %v276_v32 = vand.u32 2147483648, %v249_v14  ;;  %vm270_vm3 = vweird.f32 %v249_v14  ;;  %p621_p7 = pneg %p620_p3 }
  0x3e   : > { %v222_v19 = vadd.f32 %v544_v7, %v221_v15  ;;  %553 = vpow2.f32 %v284_v16  ;;  %v274_v37 = vand.u32 2147483647, %v249_v14  ;;  %vm260_vm7 = vcmp.eq.f32.partialorder %v259_v29, 8.507059e+37 }
  0x3f   : > { %555 = vpow2.f32 %v286_v20  ;;  %v262_v44 = vor.u32 1.1754944e-38, %v261_v30  ;;  %v277_v48 = vor.u32 1.1754944e-38, %v276_v32  ;;  %p626_p13 = pnand %p625_p12, %p621_p7 }
  0x40   : > { %v224_v21 = vsel %vm223_vm0, %v544_v7, %v222_v19  ;;  %vm275_vm9 = vcmp.eq.f32.partialorder %v274_v37, 8.507059e+37 }
  0x41   : > { %v225_v22 = vmul.f32 %v224_v21, %v216_v17  ;;  %v226_v23 = vmul.f32 %v224_v21, %v217_v18 }
  0x42   : > { %v550_v24 = vpop.eup %549 }
  0x43   : > { %v552_v25 = vpop.eup %551  ;;  %v227_v26 = vfloor.f32 %v225_v22  ;;  %v251_v27 = vmul.f32 %v550_v24, %v248_v13  ;;  %v228_v28 = vfloor.f32 %v226_v23  ;;  %vm256_vm2 = vweird.f32 %v550_v24 }
  0x44   : > { %v266_v31 = vmul.f32 %v552_v25, %v249_v14  ;;  %vm271_vm4 = vweird.f32 %v552_v25  ;;  %v554_v38 = vpop.eup %553  ;;  %vm860_vm6 = vmor %vm255_vm1, %vm256_vm2 }
  0x45   : > { %v229_v33 = vmul.f32 16.0, %v227_v26  ;;  %v252_v34 = vsub.f32 1.0, %v251_v27  ;;  %v230_v35 = vmul.f32 16.0, %v228_v28  ;;  %v556_v42 = vpop.eup %555  ;;  %vm865_vm8 = vmor %vm270_vm3, %vm271_vm4  ;;  %v289_v59 = vmul.f32 %v554_v38, %v288_v51 }
  0x46   : > { %v267_v36 = vsub.f32 1.0, %v266_v31  ;;  %v292_v61 = vmul.f32 %v554_v38, %v291_v54  ;;  %v290_v62 = vmul.f32 %v556_v42, %v288_v51  ;;  %v293_v0 = vmul.f32 %v556_v42, %v291_v54 }
  0x47   : > { %v231_v39 = vsub.f32 %v216_v17, %v229_v33  ;;  %v253_v40 = vmul.f32 %v550_v24, %v252_v34  ;;  %v232_v41 = vsub.f32 %v217_v18, %v230_v35 }
  0x48   : > { %v268_v45 = vmul.f32 %v552_v25, %v267_v36 }
  0x49   : > { %v254_v46 = vadd.f32 %v550_v24, %v253_v40  ;;  %v234_v49 = vsel %vm233_vm5, %v231_v39, %v227_v26  ;;  %v235_v53 = vsel %vm233_vm5, %v232_v41, %v228_v28 }
  0x4a   : > { %v269_v50 = vadd.f32 %v552_v25, %v268_v45 }
  0x4b   : > { %v258_v52 = vsel %vm860_vm6, %v550_v24, %v254_v46 }
  0x4c   : > { %v263_v55 = vsel %vm260_vm7, %v262_v44, %v258_v52  ;;  %v273_v56 = vsel %vm865_vm8, %v552_v25, %v269_v50 }
  0x4d   : > { %v280_v57 = vadd.f32 %v263_v55, %v234_v49  ;;  %300 = vst [vmem:[%s206_s7] sm:$0xff] %v263_v55  ;;  %v278_v58 = vsel %vm275_vm9, %v277_v48, %v273_v56 }
  0x4e   : > { %v281_v60 = vadd.f32 %v278_v58, %v235_v53  ;;  %301 = vst [vmem:[%s206_s7 + $0x8] sm:$0xff] %v278_v58 }
  0x4f   : > { %v282_v63 = vmul.f32 4.0, %v280_v57 }
  0x50   : > { %v283_v1 = vmul.f32 4.0, %v281_v60 }
  0x51   : > { %v295_v2 = vsel %vm294_vm10, %v282_v63, %v289_v59 }
  0x52   : > { %v298_v3 = vsel %vm297_vm11, %v295_v2, %v292_v61  ;;  %v296_v4 = vsel %vm294_vm10, %v283_v1, %v290_v62 }
  0x53   : > { %302 = vst [vmem:[%s206_s7] sm:$0xf] %v298_v3  ;;  %v299_v5 = vsel %vm297_vm11, %v296_v4, %v293_v0 }
  0x54   : > { %303 = vst [vmem:[%s206_s7 + $0x8] sm:$0xf] %v299_v5 }
  0x55   : > { %629 = shalt.err (!%p626_p13)
}
  0x56   : > { %459 = dma.vmem_to_hbm [thread:$0]  (%p803_p2), %s323_s8, 256, %s325_s17, %s305_s18  }
  0x57 PF: > { %s944_s29 = sld [smem:[#allocation11_spill]]  ;;  %p476_p0 = scmp.ge.s32.totalorder %s704_s16, 2 }
  0x59   : > { %p470_p4 = pnand %p476_p0, %p778_p5 }
  0x5b   : > { %p471_p6 = pneg %p470_p4 }
  0x5d   : > { %s336_s20 = sand.u32 1, %s944_s29  }
  0x5e   : > { %s337_s25 = scalar_lea.sflag [#allocation4], %s336_s20 }
  0x5f   : > { %671 = dma.done.wait (%p471_p6), %s337_s25, 256  }
  0x60   : > { %673 = vsyncadd (%p471_p6), %s337_s25, 4294967040  ;;  %s19_s16 = sadd.s32 1, %s704_s16   ;;  %s946_s30 = sld [smem:[#allocation13_spill]] }
  0x61   : > { %p16_p8 = scmp.ge.s32.totalorder %s19_s16, 8   ;;  %s947_s26 = sld [smem:[#allocation14_spill]] }
  0x62   : > { %s948_s9 = smov %s680_s10  ;;  %s949_s10 = smov %s684_s11 }
  0x63   : > { %s950_s11 = smov %s822_s24  ;;  %s951_s12 = smov %s696_s14 }
  0x64   : > { %s952_s13 = smov %s700_s15  ;;  %18 = sbr.rel (!%p16_p8) target bundleno = 10 (0xa), region = 78 }
  0x66   : > { %s953_s14 = smov %s946_s30 }
  0x67   : > { %s954_s15 = smov %s947_s26 }
  0x69   :  { %343 = vsyncpa [#allocation3], 1 }
  0x6a   :  { %345 = vsyncpa [#allocation3 + $0x1], 1 }
  0x6b   :  { %346 = vsyncpa [#allocation4], 1 }
  0x6c   :  { %348 = vsyncpa [#allocation4 + $0x1], 1 }
  0x6d   :  { %349 = vsyncpa [#allocation5], 1 }
  0x6e   :  { %351 = vsyncpa [#allocation5 + $0x1], 1 }

</bundles_post_ra>
